<compile_context>
chip_gen: v5e
topology: v5e:2x2
jax: 0.10.0
libtpu: 0.0.40
codegen_flags: <defaults>
</compile_context>

<pallas_src>
import jax
import jax.numpy as jnp
from jax.experimental import pallas as pl
from jax.experimental.pallas import tpu as pltpu

SMOOTH = 1.0   # BinaryDiceLoss.smooth ;  p = 2 is hard-coded (x*x terms)
_SUB = 8       # sublanes per inner streaming step (one (8,128) f32 vreg tile)


def _round_up(x, m):
    return ((x + m - 1) // m) * m


def _cdiv(a, b):
    return (a + b - 1) // b


def _vmem_capacity_bytes():
    try:
        return int(pltpu.get_tpu_info().vmem_capacity_bytes)
    except Exception:
        return 64 * 1024 * 1024          # conservative fallback (v7x size)


def _plan(hw, N, C, isz_p, isz_t, block_sublanes=None):
    """Pick (S, P, tpp, hw_pad, vmem_cap).

    S   : sublanes (128-lane rows) per block  -> block spatial = S*128
    P   : parallel chunks (2 whenever >1 block, engages v7x's 2nd TC)
    tpp : blocks (grid steps) per chunk
    """
    T = _cdiv(hw, 128)                           # 128-lane rows needed
    vmem_cap = _vmem_capacity_bytes()
    budget = int(0.40 * vmem_cap)                # input-window budget
    # bytes per sublane-row: both inputs, double-buffered pipeline
    per_row = 2 * N * C * 128 * (isz_p + isz_t)
    # fixed VMEM: 2 accumulators + ~8 sub-chunk f32 temporaries + slack
    fixed = (2 + 8) * N * C * _SUB * 128 * 4 + 64 * 1024

    if block_sublanes is not None:
        S0 = max(_SUB, _round_up(int(block_sublanes), _SUB))
    else:
        S0 = max(_SUB, (budget - fixed) // max(per_row, 1))
        S0 = min(S0, 2048)                       # cap per-step DMA size
        if T > _SUB:
            # never collapse to a single block when there is enough data:
            # keeps num_blocks >= 2 so P=2 (v7x second TensorCore)
            S0 = min(S0, _round_up(_cdiv(T, 2), _SUB))
        S0 = max(_SUB, (S0 // _SUB) * _SUB)

    num_blocks = _cdiv(T, S0)
    P = 2 if num_blocks >= 2 else 1
    tpp = _cdiv(num_blocks, P)
    if block_sublanes is None:
        # shrink S to the minimum that still covers T with P*tpp blocks
        # (keeps zero-padding bounded by ~8 rows per block)
        S = _round_up(_cdiv(T, P * tpp), _SUB)
    else:
        S = S0
    hw_pad = P * tpp * S * 128
    return S, P, tpp, hw_pad, vmem_cap


def _make_dice_kernel(n_sub):
    def kernel(pred_ref, targ_ref, num_ref, den_ref, num_acc, den_acc):
        ji = pl.program_id(1)                    # block within chunk (reduction)

        @pl.when(ji == 0)
        def _():
            num_acc[...] = jnp.zeros_like(num_acc)
            den_acc[...] = jnp.zeros_like(den_acc)

        # Stream the (N, C, S, 128) window in (N, C, 8, 128) sub-chunks so the
        # f32 intermediates never exceed a few vregs (no spill traffic).
        @pl.loop(0, n_sub)
        def _(i):
            off = pl.multiple_of(i * _SUB, _SUB)
            x = pred_ref[:, :, pl.ds(off, _SUB), :].astype(jnp.float32)
            t = targ_ref[:, :, pl.ds(off, _SUB), :].astype(jnp.float32)

            # channel softmax (dim=1): C is a leading (non-tiled) dim, so the
            # max / sum are plain per-vreg VPU ops across C slabs (no XLU).
            m = jnp.max(x, axis=1, keepdims=True)
            e = jnp.exp(x - m)
            z = jnp.sum(e, axis=1, keepdims=True)
            inv = pl.reciprocal(z, approx=True)  # EUP
            inv = inv * (2.0 - z * inv)          # one Newton step (VPU) -> ~f32
            s = e * inv

            num_acc[...] += s * t                # p * t
            den_acc[...] += s * s + t * t        # p^2 + t^2

        @pl.when(ji == pl.num_programs(1) - 1)
        def _():
            # single cross-sublane + cross-lane reduce per chunk, tiny store
            nrow = jnp.sum(num_acc[...], axis=2)          # (N, C, 128)
            drow = jnp.sum(den_acc[...], axis=2)
            num_ref[...] = jnp.sum(nrow, axis=2)[None]    # (1, N, C)
            den_ref[...] = jnp.sum(drow, axis=2)[None]

    return kernel


def dice_loss(predict, target, *, smooth=SMOOTH, block_sublanes=None):
    """predict, target: (N, C, *spatial) arrays of the same shape."""
    assert predict.shape == target.shape, "predict & target shape do not match"
    N, C = predict.shape[0], predict.shape[1]
    p = predict.reshape(N, C, -1)
    t = target.reshape(N, C, -1)
    hw = p.shape[-1]

    isz_p = jnp.dtype(p.dtype).itemsize
    isz_t = jnp.dtype(t.dtype).itemsize

    S, P, tpp, hw_pad, vmem_cap = _plan(hw, N, C, isz_p, isz_t, block_sublanes)
    pad = hw_pad - hw
    if pad:
        # Zero padding: softmax of an all-zero logit column is uniform (1/C)
        # and the padded target is 0, so each padded position contributes
        # exactly 0 to num and 1/C^2 to den per (n, c); subtracted analytically
        # below, so the hot loop needs no mask and never reads undefined data.
        p = jnp.pad(p, ((0, 0), (0, 0), (0, pad)))
        t = jnp.pad(t, ((0, 0), (0, 0), (0, pad)))
    p4 = p.reshape(N, C, hw_pad // 128, 128)
    t4 = t.reshape(N, C, hw_pad // 128, 128)

    # Padding-aware VMEM estimate: double-buffered inputs + accumulators +
    # sub-chunk f32 temporaries + (padded) output blocks, plus headroom.
    est = 2 * N * C * S * 128 * (isz_p + isz_t)
    est += (2 + 8) * N * C * _SUB * 128 * 4
    est += 4 * 8 * 128 * 4
    vmem_limit = int(min(int(0.9 * vmem_cap),
                         max(32 * 1024 * 1024, est + (16 << 20))))

    kernel = _make_dice_kernel(S // _SUB)
    idx_in = lambda pi, ji: (0, 0, pi * tpp + ji, 0)
    idx_out = lambda pi, ji: (pi, 0, 0)

    num_parts, den_parts = pl.pallas_call(
        kernel,
        out_shape=(
            jax.ShapeDtypeStruct((P, N, C), jnp.float32),
            jax.ShapeDtypeStruct((P, N, C), jnp.float32),
        ),
        grid_spec=pltpu.PrefetchScalarGridSpec(
            num_scalar_prefetch=0,
            grid=(P, tpp),
            in_specs=[
                pl.BlockSpec((N, C, S, 128), idx_in),
                pl.BlockSpec((N, C, S, 128), idx_in),
            ],
            out_specs=[
                pl.BlockSpec((1, N, C), idx_out),
                pl.BlockSpec((1, N, C), idx_out),
            ],
            scratch_shapes=[
                pltpu.VMEM((N, C, _SUB, 128), jnp.float32),   # num accumulator
                pltpu.VMEM((N, C, _SUB, 128), jnp.float32),   # den accumulator
            ],
        ),
        compiler_params=pltpu.CompilerParams(
            dimension_semantics=("parallel", "arbitrary"),
            vmem_limit_bytes=vmem_limit,
        ),
    )(p4, t4)

    # tiny (P, N, C) -> scalar finish in plain JAX
    num = jnp.sum(num_parts, axis=0) + smooth                        # (N, C)
    den = jnp.sum(den_parts, axis=0) - pad * (1.0 / C) ** 2 + smooth
    loss = 1.0 - num / den
    # BinaryDiceLoss reduction='mean' over batch, summed over classes, / C
    # == sum over all (n, c) / (N * C)
    return jnp.sum(loss) / (N * C)


def dice_loss_ref(predict, target, smooth=SMOOTH):
    """Pure-JAX reference matching the PyTorch module semantics."""
    N, C = predict.shape[0], predict.shape[1]
    p = jax.nn.softmax(predict.astype(jnp.float32), axis=1).reshape(N, C, -1)
    t = target.reshape(N, C, -1).astype(jnp.float32)
    num = jnp.sum(p * t, axis=2) + smooth
    den = jnp.sum(p ** 2 + t ** 2, axis=2) + smooth
    loss = 1.0 - num / den                 # (N, C)
    per_class = jnp.mean(loss, axis=0)     # reduction='mean' over batch
    return jnp.sum(per_class) / C          # total_loss / num_classes


if __name__ == "__main__":
    key = jax.random.PRNGKey(0)
    k1, k2, k3, k4 = jax.random.split(key, 4)

    # Case 1: module-consistent small shapes, auto block (single step,
    # padded 256 -> 1024 lanes with analytic den correction).
    N, C, H, W = 2, 4, 16, 16
    predict = jax.random.normal(k1, (N, C, H, W), dtype=jnp.float32)
    labels = jax.random.randint(k2, (N, H, W), 0, C)
    target = jax.nn.one_hot(labels, C, axis=1, dtype=jnp.float32)
    loss = dice_loss(predict, target)
    jax.block_until_ready(loss)
    ref = dice_loss_ref(predict, target)
    assert abs(float(loss) - float(ref)) < 1e-4, (float(loss), float(ref))

    # Case 2: ragged spatial size + bf16 inputs (halved HBM traffic) + forced
    # small block, exercising the guaranteed P=2 chunk split, multi-step
    # accumulation and the zero-pad / analytic den correction
    # (hw = 65*65 = 4225 -> 34 rows -> 6 blocks of S=8 over 2 chunks of 3).
    N2, C2, H2, W2 = 2, 3, 65, 65
    predict2 = jax.random.normal(k3, (N2, C2, H2, W2),
                                 dtype=jnp.float32).astype(jnp.bfloat16)
    labels2 = jax.random.randint(k4, (N2, H2, W2), 0, C2)
    target2 = jax.nn.one_hot(labels2, C2, axis=1, dtype=jnp.bfloat16)
    loss2 = dice_loss(predict2, target2, block_sublanes=8)
    jax.block_until_ready(loss2)
    ref2 = dice_loss_ref(predict2, target2)
    assert abs(float(loss2) - float(ref2)) < 1e-4, (float(loss2), float(ref2))

    print("KERNEL_OK")
</pallas_src>

<mosaic_0001>
module attributes {stable_mosaic.version = 11 : i64} {
  func.func @kernel(%arg0: i32, %arg1: i32, %arg2: memref<2x4x8x128xf32, #tpu.memory_space<vmem>>, %arg3: memref<2x4x8x128xf32, #tpu.memory_space<vmem>>, %arg4: memref<1x2x4xf32, #tpu.memory_space<vmem>>, %arg5: memref<1x2x4xf32, #tpu.memory_space<vmem>>, %arg6: memref<2x4x8x128xf32, #tpu.memory_space<vmem>>, %arg7: memref<2x4x8x128xf32, #tpu.memory_space<vmem>>) attributes {dimension_semantics = [#tpu.dimension_semantics<parallel>, #tpu.dimension_semantics<arbitrary>], iteration_bounds = array<i64: 1, 1>, scalar_prefetch = 0 : i64, scratch_operands = 2 : i64, tpu.core_type = #tpu.core_type<tc>, window_params = [{transform_indices = @transform_0, window_bounds = array<i64: 2, 4, 8, 128>}, {transform_indices = @transform_1, window_bounds = array<i64: 2, 4, 8, 128>}, {transform_indices = @transform_2, window_bounds = array<i64: 1, 2, 4>}, {transform_indices = @transform_3, window_bounds = array<i64: 1, 2, 4>}]} {
    %c0_i32 = arith.constant 0 : i32
    %0 = arith.cmpi eq, %arg1, %c0_i32 : i32
    %1 = arith.extui %0 : i1 to i32
    %c0_i32_0 = arith.constant 0 : i32
    %2 = arith.cmpi ne, %1, %c0_i32_0 : i32
    scf.if %2 {
      %cst_29 = arith.constant 0.000000e+00 : f32
      %38 = vector.broadcast %cst_29 : f32 to vector<2x4x8x128xf32>
      %c0_30 = arith.constant 0 : index
      %c0_31 = arith.constant 0 : index
      %c0_32 = arith.constant 0 : index
      %c0_33 = arith.constant 0 : index
      %39 = vector.load %arg6[%c0_30, %c0_31, %c0_32, %c0_33] : memref<2x4x8x128xf32, #tpu.memory_space<vmem>>, vector<2x4x8x128xf32>
      tpu.vector_store %arg6[%c0_30, %c0_31, %c0_32, %c0_33], %38 {strides = array<i32>} : memref<2x4x8x128xf32, #tpu.memory_space<vmem>>, vector<2x4x8x128xf32>,
      %cst_34 = arith.constant 0.000000e+00 : f32
      %40 = vector.broadcast %cst_34 : f32 to vector<2x4x8x128xf32>
      %c0_35 = arith.constant 0 : index
      %c0_36 = arith.constant 0 : index
      %c0_37 = arith.constant 0 : index
      %c0_38 = arith.constant 0 : index
      %41 = vector.load %arg7[%c0_35, %c0_36, %c0_37, %c0_38] : memref<2x4x8x128xf32, #tpu.memory_space<vmem>>, vector<2x4x8x128xf32>
      tpu.vector_store %arg7[%c0_35, %c0_36, %c0_37, %c0_38], %40 {strides = array<i32>} : memref<2x4x8x128xf32, #tpu.memory_space<vmem>>, vector<2x4x8x128xf32>,
    } else {
    }
    %c0_i32_1 = arith.constant 0 : i32
    %c1_i32 = arith.constant 1 : i32
    %3 = arith.muli %c0_i32_1, %c1_i32 : i32
    %c0_i32_2 = arith.constant 0 : i32
    %4 = arith.addi %c0_i32_2, %3 : i32
    %c8_i32 = arith.constant 8 : i32
    %5 = arith.muli %4, %c8_i32 : i32
    %6 = tpu.assume_multiple %5, 8 : i32
    %c0 = arith.constant 0 : index
    %c0_3 = arith.constant 0 : index
    %7 = arith.index_cast %6 : i32 to index
    %c0_4 = arith.constant 0 : index
    %8 = vector.load %arg2[%c0, %c0_3, %7, %c0_4] : memref<2x4x8x128xf32, #tpu.memory_space<vmem>>, vector<2x4x8x128xf32>
    %c0_5 = arith.constant 0 : index
    %c0_6 = arith.constant 0 : index
    %9 = arith.index_cast %6 : i32 to index
    %c0_7 = arith.constant 0 : index
    %10 = vector.load %arg3[%c0_5, %c0_6, %9, %c0_7] : memref<2x4x8x128xf32, #tpu.memory_space<vmem>>, vector<2x4x8x128xf32>
    %cst = arith.constant dense<0xFF800000> : vector<2x8x128xf32>
    %11 = vector.multi_reduction <maximumf>, %8, %cst [1] : vector<2x4x8x128xf32> to vector<2x8x128xf32>
    %12 = vector.shape_cast %11 : vector<2x8x128xf32> to vector<2x1x8x128xf32>
    %13 = vector.broadcast %12 : vector<2x1x8x128xf32> to vector<2x4x8x128xf32>
    %14 = arith.subf %8, %13 : vector<2x4x8x128xf32>
    %15 = math.exp %14 : vector<2x4x8x128xf32>
    %cst_8 = arith.constant dense<0.000000e+00> : vector<2x8x128xf32>
    %16 = vector.multi_reduction <add>, %15, %cst_8 [1] : vector<2x4x8x128xf32> to vector<2x8x128xf32>
    %17 = vector.shape_cast %16 : vector<2x8x128xf32> to vector<2x1x8x128xf32>
    %18 = tpu.reciprocal %17 {approx = true} : vector<2x1x8x128xf32> -> vector<2x1x8x128xf32>
    %19 = arith.mulf %17, %18 : vector<2x1x8x128xf32>
    %cst_9 = arith.constant 2.000000e+00 : f32
    %20 = vector.broadcast %cst_9 : f32 to vector<2x1x8x128xf32>
    %21 = arith.subf %20, %19 : vector<2x1x8x128xf32>
    %22 = arith.mulf %18, %21 : vector<2x1x8x128xf32>
    %23 = vector.broadcast %22 : vector<2x1x8x128xf32> to vector<2x4x8x128xf32>
    %24 = arith.mulf %15, %23 : vector<2x4x8x128xf32>
    %c0_10 = arith.constant 0 : index
    %c0_11 = arith.constant 0 : index
    %c0_12 = arith.constant 0 : index
    %c0_13 = arith.constant 0 : index
    %25 = vector.load %arg6[%c0_10, %c0_11, %c0_12, %c0_13] : memref<2x4x8x128xf32, #tpu.memory_space<vmem>>, vector<2x4x8x128xf32>
    %26 = arith.mulf %24, %10 : vector<2x4x8x128xf32>
    %27 = arith.addf %25, %26 : vector<2x4x8x128xf32>
    %c0_14 = arith.constant 0 : index
    %c0_15 = arith.constant 0 : index
    %c0_16 = arith.constant 0 : index
    %c0_17 = arith.constant 0 : index
    %28 = vector.load %arg6[%c0_14, %c0_15, %c0_16, %c0_17] : memref<2x4x8x128xf32, #tpu.memory_space<vmem>>, vector<2x4x8x128xf32>
    tpu.vector_store %arg6[%c0_14, %c0_15, %c0_16, %c0_17], %27 {strides = array<i32>} : memref<2x4x8x128xf32, #tpu.memory_space<vmem>>, vector<2x4x8x128xf32>,
    %c0_18 = arith.constant 0 : index
    %c0_19 = arith.constant 0 : index
    %c0_20 = arith.constant 0 : index
    %c0_21 = arith.constant 0 : index
    %29 = vector.load %arg7[%c0_18, %c0_19, %c0_20, %c0_21] : memref<2x4x8x128xf32, #tpu.memory_space<vmem>>, vector<2x4x8x128xf32>
    %30 = arith.mulf %24, %24 : vector<2x4x8x128xf32>
    %31 = arith.mulf %10, %10 : vector<2x4x8x128xf32>
    %32 = arith.addf %30, %31 : vector<2x4x8x128xf32>
    %33 = arith.addf %29, %32 : vector<2x4x8x128xf32>
    %c0_22 = arith.constant 0 : index
    %c0_23 = arith.constant 0 : index
    %c0_24 = arith.constant 0 : index
    %c0_25 = arith.constant 0 : index
    %34 = vector.load %arg7[%c0_22, %c0_23, %c0_24, %c0_25] : memref<2x4x8x128xf32, #tpu.memory_space<vmem>>, vector<2x4x8x128xf32>
    tpu.vector_store %arg7[%c0_22, %c0_23, %c0_24, %c0_25], %33 {strides = array<i32>} : memref<2x4x8x128xf32, #tpu.memory_space<vmem>>, vector<2x4x8x128xf32>,
    %c1_i32_26 = arith.constant 1 : i32
    %c0_i32_27 = arith.constant 0 : i32
    %35 = arith.cmpi eq, %arg1, %c0_i32_27 : i32
    %36 = arith.extui %35 : i1 to i32
    %c0_i32_28 = arith.constant 0 : i32
    %37 = arith.cmpi ne, %36, %c0_i32_28 : i32
    scf.if %37 {
      %c0_29 = arith.constant 0 : index
      %c0_30 = arith.constant 0 : index
      %c0_31 = arith.constant 0 : index
      %c0_32 = arith.constant 0 : index
      %38 = vector.load %arg6[%c0_29, %c0_30, %c0_31, %c0_32] : memref<2x4x8x128xf32, #tpu.memory_space<vmem>>, vector<2x4x8x128xf32>
      %cst_33 = arith.constant dense<0.000000e+00> : vector<2x4x128xf32>
      %39 = vector.multi_reduction <add>, %38, %cst_33 [2] : vector<2x4x8x128xf32> to vector<2x4x128xf32>
      %c0_34 = arith.constant 0 : index
      %c0_35 = arith.constant 0 : index
      %c0_36 = arith.constant 0 : index
      %c0_37 = arith.constant 0 : index
      %40 = vector.load %arg7[%c0_34, %c0_35, %c0_36, %c0_37] : memref<2x4x8x128xf32, #tpu.memory_space<vmem>>, vector<2x4x8x128xf32>
      %cst_38 = arith.constant dense<0.000000e+00> : vector<2x4x128xf32>
      %41 = vector.multi_reduction <add>, %40, %cst_38 [2] : vector<2x4x8x128xf32> to vector<2x4x128xf32>
      %cst_39 = arith.constant dense<0.000000e+00> : vector<2x4xf32>
      %42 = vector.multi_reduction <add>, %39, %cst_39 [2] : vector<2x4x128xf32> to vector<2x4xf32>
      %43 = vector.shape_cast %42 : vector<2x4xf32> to vector<1x2x4xf32>
      %c0_40 = arith.constant 0 : index
      %c0_41 = arith.constant 0 : index
      %c0_42 = arith.constant 0 : index
      %44 = vector.load %arg4[%c0_40, %c0_41, %c0_42] : memref<1x2x4xf32, #tpu.memory_space<vmem>>, vector<1x2x4xf32>
      tpu.vector_store %arg4[%c0_40, %c0_41, %c0_42], %43 {strides = array<i32>} : memref<1x2x4xf32, #tpu.memory_space<vmem>>, vector<1x2x4xf32>,
      %cst_43 = arith.constant dense<0.000000e+00> : vector<2x4xf32>
      %45 = vector.multi_reduction <add>, %41, %cst_43 [2] : vector<2x4x128xf32> to vector<2x4xf32>
      %46 = vector.shape_cast %45 : vector<2x4xf32> to vector<1x2x4xf32>
      %c0_44 = arith.constant 0 : index
      %c0_45 = arith.constant 0 : index
      %c0_46 = arith.constant 0 : index
      %47 = vector.load %arg5[%c0_44, %c0_45, %c0_46] : memref<1x2x4xf32, #tpu.memory_space<vmem>>, vector<1x2x4xf32>
      tpu.vector_store %arg5[%c0_44, %c0_45, %c0_46], %46 {strides = array<i32>} : memref<1x2x4xf32, #tpu.memory_space<vmem>>, vector<1x2x4xf32>,
    } else {
    }
    return
  }
  func.func @transform_0(%arg0: i32, %arg1: i32) -> (i32, i32, i32, i32) {
    %c1_i32 = arith.constant 1 : i32
    %0 = arith.muli %arg0, %c1_i32 : i32
    %1 = arith.addi %0, %arg1 : i32
    %c0_i32 = arith.constant 0 : i32
    %c0_i32_0 = arith.constant 0 : i32
    %c0_i32_1 = arith.constant 0 : i32
    %c0_i32_2 = arith.constant 0 : i32
    return %c0_i32, %c0_i32_0, %1, %c0_i32_1 : i32, i32, i32, i32
  }
  func.func @transform_1(%arg0: i32, %arg1: i32) -> (i32, i32, i32, i32) {
    %c1_i32 = arith.constant 1 : i32
    %0 = arith.muli %arg0, %c1_i32 : i32
    %1 = arith.addi %0, %arg1 : i32
    %c0_i32 = arith.constant 0 : i32
    %c0_i32_0 = arith.constant 0 : i32
    %c0_i32_1 = arith.constant 0 : i32
    %c0_i32_2 = arith.constant 0 : i32
    return %c0_i32, %c0_i32_0, %1, %c0_i32_1 : i32, i32, i32, i32
  }
  func.func @transform_2(%arg0: i32, %arg1: i32) -> (i32, i32, i32) {
    %c0_i32 = arith.constant 0 : i32
    %c0_i32_0 = arith.constant 0 : i32
    %c0_i32_1 = arith.constant 0 : i32
    return %arg0, %c0_i32, %c0_i32_0 : i32, i32, i32
  }
  func.func @transform_3(%arg0: i32, %arg1: i32) -> (i32, i32, i32) {
    %c0_i32 = arith.constant 0 : i32
    %c0_i32_0 = arith.constant 0 : i32
    %c0_i32_1 = arith.constant 0 : i32
    return %arg0, %c0_i32, %c0_i32_0 : i32, i32, i32
  }
}

</mosaic_0001>

<bundles_post_ra>
// kernel: tpu_custom_call.1
= control target key start
LH: loop header
LB: loop body
LE: loop exit
PB: predicated region body
PF: predicated region fallthrough
CT: control target
= control target key end

     0   :  { %9 = vsyncpa [#allocation5], 0  ;;  %s664_s0 = inlined_call_operand.hbm [shape: f32[2,4,8,128], index: 0, kind: input, shape index: {}]   ;;  %s665_s1 = inlined_call_operand.hbm [shape: f32[2,4,8,128], index: 1, kind: input, shape index: {}]   ;;  %s666_s2 = inlined_call_operand.hbm [shape: f32[1,2,4], index: 2, kind: output, shape index: {0}]   ;;  %s667_s3 = inlined_call_operand.hbm [shape: f32[1,2,4], index: 3, kind: output, shape index: {1}]  }
   0x1   :  { %10 = vsyncpa [#allocation8], 0 }
   0x2   :  { %11 = vsyncpa [#allocation6], 0 }
   0x3   :  { %12 = vsyncpa [#allocation11], 0  ;;  %s20_s14 = sshll.u32 %s664_s0, 4  ;;  %s567_s15 = smov [#allocation4]   ;;  %s21_s14 = int_to_ptr.hbm [resolvable:$true] %s20_s14 }
   0x4   :  { %s22_s16 = sshll.u32 %s567_s15, 4  ;;  %s36_s19 = sshll.u32 %s665_s1, 4  ;;  %s23_s16 = int_to_ptr.vmem [resolvable:$true] %s22_s16  ;;  %s37_s19 = int_to_ptr.hbm [resolvable:$true] %s36_s19 }
   0x5   :  { %s568_s20 = smov 128   ;;  %s569_s21 = smov 8  }
   0x6   :  { %28 = dma.hbm_to_vmem [thread:$0]  %s21_s14, 1024, %s23_s16, [#allocation5], %s568_s20, %s568_s20, %s569_s21  }
   0x7   :  { %s570_s22 = smov [#allocation7]  }
   0x8   :  { %s38_s23 = sshll.u32 %s570_s22, 4  ;;  %s39_s23 = int_to_ptr.vmem [resolvable:$true] %s38_s23 }
   0x9   :  { %44 = dma.hbm_to_vmem [thread:$0]  %s37_s19, 1024, %s39_s23, [#allocation8], %s568_s20, %s568_s20, %s569_s21  }
   0xa   :  { %559 = dma.done.wait [#allocation5], 1024  }
   0xb   :  { %560 = vsyncadd [#allocation5], 4294966272 }
   0xc   :  { %561 = dma.done.wait [#allocation8], 1024  }
   0xd   :  { %562 = vsyncadd [#allocation8], 4294966272  ;;  %v75_v0 = vld [vmem:[#allocation4] sm:$0xff]  ;;  %v76_v1 = vld [vmem:[#allocation4 + $0x8] sm:$0xff]  ;;  %vm346_vm0 = vcmask 1041409   ;;  %vm348_vm1 = vcmask 1042434  }
   0xe   :  { %v77_v2 = vld [vmem:[#allocation4 + $0x10] sm:$0xff]  ;;  %v78_v3 = vld [vmem:[#allocation4 + $0x18] sm:$0xff]  ;;  %v79_v6 = vld [vmem:[#allocation4 + $0x20] sm:$0xff]  ;;  %vm350_vm2 = vcmask 1043459   ;;  %vm357_vm3 = vcmask 1043456   ;;  %s571_s0 = smov [#allocation9]  }
   0xf   :  { %v91_v4 = vmax.f32 %v75_v0, %v77_v2  ;;  %v92_v5 = vmax.f32 %v76_v1, %v78_v3  ;;  %v80_v7 = vld [vmem:[#allocation4 + $0x28] sm:$0xff]  ;;  %v81_v8 = vld [vmem:[#allocation4 + $0x30] sm:$0xff]  ;;  %v82_v9 = vld [vmem:[#allocation4 + $0x38] sm:$0xff]  ;;  %s408_s1 = sshll.u32 %s571_s0, 4  ;;  %s410_s26 = sshll.u32 %s666_s2, 4  ;;  %vm372_vm4 = vcmask 25600   ;;  %s409_s1 = int_to_ptr.vmem [resolvable:$true] %s408_s1  ;;  %s411_s26 = int_to_ptr.hbm [resolvable:$true] %s410_s26 }
  0x10   :  { %v94_v11 = vmax.f32 %v79_v6, %v81_v8  ;;  %v95_v12 = vmax.f32 %v80_v7, %v82_v9  ;;  %v83_v46 = vld [vmem:[#allocation7] sm:$0xff]  ;;  %v84_v47 = vld [vmem:[#allocation7 + $0x8] sm:$0xff]  ;;  %v85_v48 = vld [vmem:[#allocation7 + $0x10] sm:$0xff]  ;;  %s572_s27 = smov [#allocation10]   ;;  %s421_s4 = sshll.u32 %s667_s3, 4  ;;  %s422_s4 = int_to_ptr.hbm [resolvable:$true] %s421_s4 }
  0x11   :  { %v93_v10 = vmax.f32 %v91_v4, %v92_v5  ;;  %v86_v51 = vld [vmem:[#allocation7 + $0x18] sm:$0xff]  ;;  %v613_v53 = vld [vmem:[#allocation7 + $0x20] sm:$0xff]  ;;  %v615_v54 = vld [vmem:[#allocation7 + $0x28] sm:$0xff]  ;;  %v191_v56 = vmul.f32 %v83_v46, %v83_v46  ;;  %v192_v57 = vmul.f32 %v84_v47, %v84_v47  ;;  %v193_v58 = vmul.f32 %v85_v48, %v85_v48  ;;  %s419_s28 = sshll.u32 %s572_s27, 4  ;;  %s420_s28 = int_to_ptr.vmem [resolvable:$true] %s419_s28 }
  0x12   :  { %v96_v17 = vmax.f32 %v94_v11, %v95_v12  ;;  %v194_v63 = vmul.f32 %v86_v51, %v86_v51 }
  0x13   :  { %v97_v13 = vsub.f32 %v75_v0, %v93_v10  ;;  %v98_v14 = vsub.f32 %v76_v1, %v93_v10  ;;  %v99_v15 = vsub.f32 %v77_v2, %v93_v10  ;;  %v100_v16 = vsub.f32 %v78_v3, %v93_v10 }
  0x14   :  { %v101_v22 = vsub.f32 %v79_v6, %v96_v17  ;;  %v102_v23 = vsub.f32 %v80_v7, %v96_v17  ;;  %v103_v24 = vsub.f32 %v81_v8, %v96_v17  ;;  %v104_v25 = vsub.f32 %v82_v9, %v96_v17 }
  0x15   :  { %v105_v18 = vmul.f32 1.442695, %v97_v13  ;;  %v107_v19 = vmul.f32 1.442695, %v98_v14  ;;  %v109_v20 = vmul.f32 1.442695, %v99_v15  ;;  %v623_v1 = vmul.f32 %v613_v53, %v613_v53 }
  0x16   :  { %v111_v21 = vmul.f32 1.442695, %v100_v16  ;;  %v113_v26 = vmul.f32 1.442695, %v101_v22  ;;  %v115_v27 = vmul.f32 1.442695, %v102_v23  ;;  %v627_v2 = vmul.f32 %v615_v54, %v615_v54 }
  0x17   :  { %443 = vpow2.f32 %v105_v18  ;;  %v117_v28 = vmul.f32 1.442695, %v103_v24  ;;  %v119_v29 = vmul.f32 1.442695, %v104_v25 }
  0x18   :  { %445 = vpow2.f32 %v107_v19 }
  0x19   :  { %447 = vpow2.f32 %v109_v20 }
  0x1a   :  { %449 = vpow2.f32 %v111_v21 }
  0x1b   :  { %451 = vpow2.f32 %v113_v26 }
  0x1c   :  { %453 = vpow2.f32 %v115_v27 }
  0x1d   :  { %v444_v30 = vpop.eup %443  ;;  %455 = vpow2.f32 %v117_v28 }
  0x1e   :  { %v446_v31 = vpop.eup %445  ;;  %457 = vpow2.f32 %v119_v29 }
  0x1f   :  { %v448_v32 = vpop.eup %447  ;;  %v121_v33 = vadd.f32 %v446_v31, %v444_v30 }
  0x20   :  { %v450_v34 = vpop.eup %449 }
  0x21   :  { %v599_v35 = vpop.eup %451  ;;  %v122_v36 = vadd.f32 %v448_v32, %v121_v33 }
  0x22   :  { %v601_v37 = vpop.eup %453 }
  0x23   :  { %v603_v38 = vpop.eup %455  ;;  %v123_v39 = vadd.f32 %v450_v34, %v122_v36  ;;  %v124_v40 = vadd.f32 %v601_v37, %v599_v35 }
  0x24   :  { %v607_v41 = vpop.eup %457 }
  0x25   :  { %459 = vrcp.f32 %v123_v39  ;;  %v125_v42 = vadd.f32 %v603_v38, %v124_v40 }
  0x27   :  { %v126_v43 = vadd.f32 %v607_v41, %v125_v42 }
  0x29   :  { %461 = vrcp.f32 %v126_v43 }
  0x2b   :  { %v460_v44 = vpop.eup %459 }
  0x2c   :  { %v129_v45 = vmul.f32 %v460_v44, %v123_v39 }
  0x2e   :  { %v131_v49 = vsub.f32 2.0, %v129_v45 }
  0x2f   :  { %v611_v50 = vpop.eup %461 }
  0x30   :  { %v133_v52 = vmul.f32 %v460_v44, %v131_v49  ;;  %v618_v55 = vmul.f32 %v611_v50, %v126_v43 }
  0x32   :  { %v135_v59 = vmul.f32 %v444_v30, %v133_v52  ;;  %v136_v60 = vmul.f32 %v446_v31, %v133_v52  ;;  %v137_v61 = vmul.f32 %v448_v32, %v133_v52  ;;  %v138_v62 = vmul.f32 %v450_v34, %v133_v52 }
  0x33   :  { %v132_v0 = vsub.f32 2.0, %v618_v55 }
  0x34   :  { %v151_v3 = vmul.f32 %v135_v59, %v83_v46  ;;  %v152_v4 = vmul.f32 %v136_v60, %v84_v47  ;;  %v153_v5 = vmul.f32 %v137_v61, %v85_v48  ;;  %v154_v6 = vmul.f32 %v138_v62, %v86_v51 }
  0x35   :  { %v183_v7 = vmul.f32 %v135_v59, %v135_v59  ;;  %v184_v8 = vmul.f32 %v136_v60, %v136_v60  ;;  %v185_v9 = vmul.f32 %v137_v61, %v137_v61  ;;  %v186_v10 = vmul.f32 %v138_v62, %v138_v62  ;;  %v89_v59 = vld [vmem:[#allocation7 + $0x30] sm:$0xff]  ;;  %v90_v60 = vld [vmem:[#allocation7 + $0x38] sm:$0xff] }
  0x36   :  { %v234_v11 = vrot.slane %v151_v3, 4  ;;  %v240_v12 = vrot.slane %v152_v4, 4  ;;  %v246_v13 = vrot.slane %v153_v5, 4  ;;  %v252_v14 = vrot.slane %v154_v6, 4 }
  0x37   :  { %v199_v15 = vadd.f32 %v191_v56, %v183_v7  ;;  %v200_v16 = vadd.f32 %v192_v57, %v184_v8  ;;  %v201_v17 = vadd.f32 %v193_v58, %v185_v9  ;;  %v202_v18 = vadd.f32 %v194_v63, %v186_v10 }
  0x38   :  { %v235_v19 = vadd.f32 %v234_v11, %v151_v3  ;;  %v241_v20 = vadd.f32 %v240_v12, %v152_v4  ;;  %v247_v21 = vadd.f32 %v246_v13, %v153_v5  ;;  %v253_v22 = vadd.f32 %v252_v14, %v154_v6 }
  0x39   :  { %v290_v23 = vrot.slane %v199_v15, 4  ;;  %v296_v24 = vrot.slane %v200_v16, 4  ;;  %v302_v25 = vrot.slane %v201_v17, 4  ;;  %v308_v26 = vrot.slane %v202_v18, 4 }
  0x3a   :  { %v236_v27 = vrot.slane %v235_v19, 2  ;;  %v242_v28 = vrot.slane %v241_v20, 2  ;;  %v248_v29 = vrot.slane %v247_v21, 2  ;;  %v254_v30 = vrot.slane %v253_v22, 2 }
  0x3b   :  { %v291_v31 = vadd.f32 %v290_v23, %v199_v15  ;;  %v297_v32 = vadd.f32 %v296_v24, %v200_v16  ;;  %v303_v33 = vadd.f32 %v302_v25, %v201_v17  ;;  %v309_v34 = vadd.f32 %v308_v26, %v202_v18 }
  0x3c   :  { %v237_v36 = vadd.f32 %v236_v27, %v235_v19  ;;  %v243_v39 = vadd.f32 %v242_v28, %v241_v20  ;;  %v249_v40 = vadd.f32 %v248_v29, %v247_v21  ;;  %v255_v42 = vadd.f32 %v254_v30, %v253_v22 }
  0x3d   :  { %v292_v43 = vrot.slane %v291_v31, 2  ;;  %v298_v44 = vrot.slane %v297_v32, 2  ;;  %v304_v45 = vrot.slane %v303_v33, 2  ;;  %v310_v46 = vrot.slane %v309_v34, 2 }
  0x3e   :  { %v238_v47 = vrot.slane %v237_v36, 1  ;;  %v244_v48 = vrot.slane %v243_v39, 1  ;;  %v250_v49 = vrot.slane %v249_v40, 1  ;;  %v256_v51 = vrot.slane %v255_v42, 1 }
  0x3f   :  { %v293_v52 = vadd.f32 %v292_v43, %v291_v31  ;;  %v299_v56 = vadd.f32 %v298_v44, %v297_v32  ;;  %v305_v57 = vadd.f32 %v304_v45, %v303_v33  ;;  %v311_v58 = vadd.f32 %v310_v46, %v309_v34 }
  0x40   :  { %v239_v61 = vadd.f32 %v238_v47, %v237_v36  ;;  %v245_v62 = vadd.f32 %v244_v48, %v243_v39  ;;  %v251_v63 = vadd.f32 %v250_v49, %v249_v40  ;;  %v257_v3 = vadd.f32 %v256_v51, %v255_v42 }
  0x41   :  { %v294_v4 = vrot.slane %v293_v52, 1  ;;  %v300_v5 = vrot.slane %v299_v56, 1  ;;  %v306_v6 = vrot.slane %v305_v57, 1  ;;  %v312_v7 = vrot.slane %v311_v58, 1 }
  0x42   :  { %v347_v8 = vsel %vm346_vm0, %v245_v62, %v239_v61  ;;  %v134_v9 = vmul.f32 %v611_v50, %v132_v0  ;;  %v197_v10 = vmul.f32 %v89_v59, %v89_v59  ;;  %v198_v11 = vmul.f32 %v90_v60, %v90_v60 }
  0x43   :  { %v349_v12 = vsel %vm348_vm1, %v251_v63, %v347_v8  ;;  %v295_v13 = vadd.f32 %v294_v4, %v293_v52  ;;  %v301_v14 = vadd.f32 %v300_v5, %v299_v56  ;;  %v307_v15 = vadd.f32 %v306_v6, %v305_v57 }
  0x44   :  { %v351_v16 = vsel %vm350_vm2, %v257_v3, %v349_v12  ;;  %v313_v17 = vadd.f32 %v312_v7, %v311_v58  ;;  %v139_v18 = vmul.f32 %v599_v35, %v134_v9  ;;  %v140_v19 = vmul.f32 %v601_v37, %v134_v9 }
  0x45   :  { %v358_v20 = vsel %vm357_vm3, %v351_v16, 0.0  ;;  %v382_v55 = vsel %vm346_vm0, %v301_v14, %v295_v13  ;;  %v141_v50 = vmul.f32 %v603_v38, %v134_v9  ;;  %v142_v0 = vmul.f32 %v607_v41, %v134_v9 }
  0x46   :  { %359 = vadd.xlane.f32.xlu0 %v358_v20  ;;  %v383_v21 = vsel %vm348_vm1, %v307_v15, %v382_v55  ;;  %v155_v22 = vmul.f32 %v139_v18, %v613_v53  ;;  %v156_v23 = vmul.f32 %v140_v19, %v615_v54  ;;  %v187_v24 = vmul.f32 %v139_v18, %v139_v18 }
  0x47   :  { %v384_v35 = vsel %vm350_vm2, %v313_v17, %v383_v21  ;;  %v157_v25 = vmul.f32 %v141_v50, %v89_v59  ;;  %v158_v37 = vmul.f32 %v142_v0, %v90_v60  ;;  %v188_v26 = vmul.f32 %v140_v19, %v140_v19 }
  0x48   :  { %v390_v27 = vsel %vm357_vm3, %v384_v35, 0.0  ;;  %v258_v28 = vrot.slane %v155_v22, 4  ;;  %v264_v29 = vrot.slane %v156_v23, 4  ;;  %v189_v38 = vmul.f32 %v141_v50, %v141_v50 }
  0x49   :  { %391 = vadd.xlane.f32.xlu1 %v390_v27  ;;  %v270_v41 = vrot.slane %v157_v25, 4  ;;  %v276_v30 = vrot.slane %v158_v37, 4  ;;  %v190_v31 = vmul.f32 %v142_v0, %v142_v0  ;;  %v203_v32 = vadd.f32 %v623_v1, %v187_v24 }
  0x4a   :  { %v259_v53 = vadd.f32 %v258_v28, %v155_v22  ;;  %v265_v33 = vadd.f32 %v264_v29, %v156_v23  ;;  %v204_v54 = vadd.f32 %v627_v2, %v188_v26  ;;  %v205_v34 = vadd.f32 %v197_v10, %v189_v38 }
  0x4b   :  { %v271_v36 = vadd.f32 %v270_v41, %v157_v25  ;;  %v277_v39 = vadd.f32 %v276_v30, %v158_v37  ;;  %v206_v40 = vadd.f32 %v198_v11, %v190_v31  ;;  %v314_v42 = vrot.slane %v203_v32, 4 }
  0x4c   :  { %v260_v43 = vrot.slane %v259_v53, 2  ;;  %v266_v44 = vrot.slane %v265_v33, 2  ;;  %v320_v45 = vrot.slane %v204_v54, 4  ;;  %v326_v46 = vrot.slane %v205_v34, 4 }
  0x4d   :  { %v272_v47 = vrot.slane %v271_v36, 2  ;;  %v278_v48 = vrot.slane %v277_v39, 2  ;;  %v315_v49 = vadd.f32 %v314_v42, %v203_v32  ;;  %v332_v51 = vrot.slane %v206_v40, 4 }
  0x4e   :  { %v261_v52 = vadd.f32 %v260_v43, %v259_v53  ;;  %v267_v56 = vadd.f32 %v266_v44, %v265_v33  ;;  %v321_v1 = vadd.f32 %v320_v45, %v204_v54  ;;  %v327_v57 = vadd.f32 %v326_v46, %v205_v34 }
  0x4f   :  { %v273_v58 = vadd.f32 %v272_v47, %v271_v36  ;;  %v279_v59 = vadd.f32 %v278_v48, %v277_v39  ;;  %v316_v2 = vrot.slane %v315_v49, 2  ;;  %v333_v60 = vadd.f32 %v332_v51, %v206_v40 }
  0x50   :  { %v262_v61 = vrot.slane %v261_v52, 1  ;;  %v268_v62 = vrot.slane %v267_v56, 1  ;;  %v322_v63 = vrot.slane %v321_v1, 2  ;;  %v328_v3 = vrot.slane %v327_v57, 2 }
  0x51   :  { %v274_v4 = vrot.slane %v273_v58, 1  ;;  %v280_v5 = vrot.slane %v279_v59, 1  ;;  %v317_v6 = vadd.f32 %v316_v2, %v315_v49  ;;  %v334_v7 = vrot.slane %v333_v60, 2 }
  0x52   :  { %v263_v8 = vadd.f32 %v262_v61, %v261_v52  ;;  %v269_v9 = vadd.f32 %v268_v62, %v267_v56  ;;  %v323_v10 = vadd.f32 %v322_v63, %v321_v1  ;;  %v329_v11 = vadd.f32 %v328_v3, %v327_v57 }
  0x53   :  { %v275_v12 = vadd.f32 %v274_v4, %v273_v58  ;;  %v281_v13 = vadd.f32 %v280_v5, %v279_v59  ;;  %v318_v14 = vrot.slane %v317_v6, 1  ;;  %v335_v15 = vadd.f32 %v334_v7, %v333_v60 }
  0x54   :  { %v352_v16 = vsel %vm346_vm0, %v269_v9, %v263_v8  ;;  %v324_v17 = vrot.slane %v323_v10, 1  ;;  %v330_v18 = vrot.slane %v329_v11, 1  ;;  %v366_v27 = vlaneseq }
  0x55   :  { %v353_v19 = vsel %vm348_vm1, %v275_v12, %v352_v16  ;;  %v319_v20 = vadd.f32 %v318_v14, %v317_v6  ;;  %v336_v55 = vrot.slane %v335_v15, 1 }
  0x56   :  { %v354_v50 = vsel %vm350_vm2, %v281_v13, %v353_v19  ;;  %v325_v0 = vadd.f32 %v324_v17, %v323_v10  ;;  %v331_v21 = vadd.f32 %v330_v18, %v329_v11  ;;  %v367_v29 = vand.u32 127, %v366_v27 }
  0x57   :  { %v361_v22 = vsel %vm357_vm3, %v354_v50, 0.0  ;;  %v337_v23 = vadd.f32 %v336_v55, %v335_v15 }
  0x58   :  { %362 = vadd.xlane.f32.xlu0 %v361_v22  ;;  %v385_v24 = vsel %vm346_vm0, %v325_v0, %v319_v20 }
  0x59   :  { %v386_v35 = vsel %vm348_vm1, %v331_v21, %v385_v24 }
  0x5a   :  { %v387_v25 = vsel %vm350_vm2, %v337_v23, %v386_v35 }
  0x5b   :  { %v393_v37 = vsel %vm357_vm3, %v387_v25, 0.0 }
  0x5c   :  { %394 = vadd.xlane.f32.xlu1 %v393_v37 }
  0xb9   :  { %v360_v26 = vpop.xlane.xlu0 %359 }
  0xba   :  { %v368_v41 = vperm.slane %v360_v26, %v367_v29 }
  0xbc   :  { %v392_v28 = vpop.xlane.xlu1 %391 }
  0xbd   :  { %v398_v53 = vperm.slane %v392_v28, %v367_v29 }
  0xcb   :  { %v363_v38 = vpop.xlane.xlu0 %362 }
  0xcc   :  { %v369_v30 = vperm.slane %v363_v38, %v367_v29 }
  0xce   :  { %v370_v31 = vsel %vm346_vm0, %v369_v30, %v368_v41 }
  0xcf   :  { %v395_v32 = vpop.xlane.xlu1 %394  ;;  %373 = vst.msk [vmem:[#allocation9] sm:$0x3] %vm372_vm4, %v370_v31 }
  0xd0   :  { %v399_v33 = vperm.slane %v395_v32, %v367_v29  ;;  %413 = dma.vmem_to_hbm [thread:$0]  %s409_s1, 32, %s411_s26, [#allocation6]  }
  0xd2   :  { %v400_v54 = vsel %vm346_vm0, %v399_v33, %v398_v53 }
  0xd3   :  { %402 = vst.msk [vmem:[#allocation10] sm:$0x3] %vm372_vm4, %v400_v54 }
  0xd4   :  { %424 = dma.vmem_to_hbm [thread:$0]  %s420_s28, 32, %s422_s4, [#allocation11]  }
  0xd5   :  { %563 = dma.done.wait [#allocation6], 32  }
  0xd6   :  { %564 = vsyncadd [#allocation6], 4294967264 }
  0xd7   :  { %565 = dma.done.wait [#allocation11], 32  }
  0xd8   :  { %566 = vsyncadd [#allocation11], 4294967264 }
  0xd9   :  { %433 = vsyncpa [#allocation5], 1 }
  0xda   :  { %434 = vsyncpa [#allocation8], 1 }
  0xdb   :  { %435 = vsyncpa [#allocation6], 1 }
  0xdc   :  { %436 = vsyncpa [#allocation11], 1 }

</bundles_post_ra>
